<compile_context>
chip_gen: v6e
topology: v6e:2x2x1
jax: 0.10.0
libtpu: 0.0.40
codegen_flags: <defaults>
</compile_context>

<pallas_src>
import jax
import jax.numpy as jnp
from jax.experimental import pallas as pl
from jax.experimental.pallas import tpu as pltpu


_C = 133  # channel dim fixed by the module


def _flatten_permute_kernel(x_ref, o_ref):
    # x_ref: (C, TILE_N) tile in VMEM ; o_ref: (TILE_N, C) tile in VMEM.
    # Single 2-D transpose (XLU); leading dims were squeezed by the BlockSpec.
    o_ref[...] = x_ref[...].T


def _round_up(x: int, m: int) -> int:
    return ((x + m - 1) // m) * m


def _tpu_generation() -> str:
    """Best-effort TPU generation detection; falls back to v6e-style defaults."""
    try:
        kind = jax.devices()[0].device_kind.lower()
    except Exception:
        kind = ""
    if "v5 lite" in kind or "v5e" in kind or "v5litepod" in kind:
        return "v5e"
    if "v7" in kind:
        return "v7x"
    return "v6e"


def _tile_policy(n: int, itemsize: int, batch: int, generation: str) -> int:
    """Pick TILE_N: byte-budgeted per generation, balanced, >=512, TC-even on v7x."""
    base_f32 = {"v5e": 2048, "v6e": 4096, "v7x": 8192}[generation]
    cap = max(128, (base_f32 * 4) // max(itemsize, 1))  # scale by 4/itemsize
    dual_tc = generation == "v7x"

    if n <= cap:
        num_tiles = 1
        # v7x: if batch alone can't split evenly across the 2 TCs, split N.
        if dual_tc and (batch % 2 == 1) and n >= 1024:
            num_tiles = 2
    else:
        num_tiles = pl.cdiv(n, cap)
        # v7x: keep total grid steps even so neither TensorCore idles.
        if dual_tc and (batch * num_tiles) % 2 == 1:
            num_tiles += 1

    if num_tiles == 1:
        return n  # full-extent block: always a legal block dim
    # Balanced, 128-aligned tiles (lane dim of input block / sublane dim of
    # output block), with a >=512 floor for strided-DMA efficiency.
    tile_n = max(_round_up(pl.cdiv(n, num_tiles), 128), 512)
    if tile_n >= n:
        tile_n = n
    return tile_n


def _vmem_bytes_estimate(tile_n: int, itemsize: int) -> int:
    """Double-buffered in+out VMEM footprint of one (C, tile_n)/(tile_n, C) pair."""
    sublane = 8 * max(1, 4 // max(itemsize, 1))   # packed sublanes for narrow dtypes
    in_rows = _round_up(_C, sublane)              # input block (C, tile_n) sublane pad
    out_lanes = _round_up(_C, 128)                # output block (tile_n, C) lane pad
    return 2 * (in_rows + out_lanes) * tile_n * itemsize


def flatten_module(x, *, max_tile_n: int | None = None, force_pallas: bool = False):
    """Equivalent of PyTorch Flatten.forward.

    x: (B, 133, H, W)  (NCHW)  ->  returns (B, H*W, 133)

    max_tile_n: explicit TILE_N override (tests / tuning only); None = auto policy.
    """
    B, C = x.shape[0], x.shape[1]
    assert C == _C, f"Flatten expects channel dim {_C}, got {C}"
    n = 1
    for d in x.shape[2:]:
        n *= d
    # view(x.size(0), 133, -1): pure reshape, no data movement.
    x3 = x.reshape(B, C, n)

    itemsize = x.dtype.itemsize
    gen = _tpu_generation()
    total_bytes = B * C * n * itemsize

    # Small-input fast path: below the per-generation threshold the fixed
    # pallas_call launch / fusion-boundary cost exceeds the DMA time; let XLA
    # handle (and fuse) the transpose.
    fast_thresh = (4 << 20) if gen == "v7x" else (1 << 20)
    if not force_pallas and total_bytes < fast_thresh:
        return jnp.transpose(x3, (0, 2, 1))

    if max_tile_n is not None:
        tile_n = min(n, max_tile_n)          # explicit override (test-only)
    else:
        tile_n = _tile_policy(n, itemsize, B, gen)

    num_tiles = pl.cdiv(n, tile_n)
    grid = (B, num_tiles)

    # Raise the scoped-VMEM limit only when the large-tile (v7x) config needs it.
    vmem_est = _vmem_bytes_estimate(tile_n, itemsize)
    vmem_limit = (48 << 20) if vmem_est > (24 << 20) else None

    # Deeper input buffering on v7x hides DMA jitter behind short per-tile times.
    in_pipeline_mode = pl.Buffered(3) if (gen == "v7x" and num_tiles >= 3) else None
    in_spec_kwargs = {"pipeline_mode": in_pipeline_mode} if in_pipeline_mode else {}

    out = pl.pallas_call(
        _flatten_permute_kernel,
        out_shape=jax.ShapeDtypeStruct((B, n, C), x.dtype),
        grid_spec=pltpu.PrefetchScalarGridSpec(
            num_scalar_prefetch=0,
            grid=grid,
            # Squeeze the batch dim; tile the flattened spatial dim.
            #   input block : (C, tile_n)   -> kernel sees 2-D (133, tile_n)
            #   output block: (tile_n, C)   -> kernel sees 2-D (tile_n, 133)
            in_specs=[
                pl.BlockSpec((pl.Squeezed(), C, tile_n),
                             lambda b, t: (b, 0, t),
                             **in_spec_kwargs),
            ],
            out_specs=pl.BlockSpec((pl.Squeezed(), tile_n, C),
                                   lambda b, t: (b, t, 0)),
        ),
        compiler_params=pltpu.CompilerParams(
            # Both axes independent: lets dual-TC chips (v7x) load-balance
            # batch and spatial tiles; harmless on single-TC v5e/v6e.
            dimension_semantics=("parallel", "parallel"),
            vmem_limit_bytes=vmem_limit,
        ),
        # Pure memory-bound copy: one read + one write of the whole tensor.
        cost_estimate=pl.CostEstimate(
            flops=0, transcendentals=0, bytes_accessed=2 * total_bytes),
    )(x3)
    return out


if __name__ == "__main__":
    key = jax.random.PRNGKey(0)
    # Small conv-feature-map-like input: B=2, C=133 (fixed by the module).
    B, C, H, W = 2, 133, 16, 16
    x = jax.random.normal(key, (B, C, H, W), dtype=jnp.float32)

    ref = jnp.transpose(x.reshape(B, C, H * W), (0, 2, 1))

    # 1) Exercise the Pallas kernel path with the auto tile policy.
    y = flatten_module(x, force_pallas=True)
    y = jax.block_until_ready(y)
    assert y.shape == (B, H * W, C), y.shape
    assert y.dtype == x.dtype
    assert jnp.array_equal(y, ref), "pallas path mismatch vs reference"

    # 2) Exercise the multi-tile path (explicit test-only tile override).
    y_tiled = jax.block_until_ready(
        flatten_module(x, max_tile_n=128, force_pallas=True)
    )
    assert jnp.array_equal(y_tiled, ref), "tiled pallas path mismatch vs reference"

    # 3) Non-divisible N with a partial trailing tile (masked edge block).
    H2, W2 = 16, 10  # n = 160, tile_n = 128 -> 2 tiles (last is partial)
    x2 = jax.random.normal(jax.random.PRNGKey(1), (B, C, H2, W2), dtype=jnp.float32)
    ref2 = jnp.transpose(x2.reshape(B, C, H2 * W2), (0, 2, 1))
    y2 = jax.block_until_ready(
        flatten_module(x2, max_tile_n=128, force_pallas=True)
    )
    assert jnp.array_equal(y2, ref2), "partial-tile pallas path mismatch vs reference"

    # 4) Narrow dtype (bf16) exercises the byte-budgeted tile scaling.
    xb = x.astype(jnp.bfloat16)
    refb = jnp.transpose(xb.reshape(B, C, H * W), (0, 2, 1))
    yb = jax.block_until_ready(flatten_module(xb, force_pallas=True))
    assert yb.dtype == jnp.bfloat16
    assert jnp.array_equal(yb, refb), "bf16 pallas path mismatch vs reference"

    # 5) Default wrapper behaviour (small-input fast path).
    y_fast = jax.block_until_ready(flatten_module(x))
    assert jnp.array_equal(y_fast, ref), "fast path mismatch vs reference"

    print("KERNEL_OK")
</pallas_src>

<mosaic_0001>
module attributes {stable_mosaic.version = 11 : i64} {
  func.func @_flatten_permute_kernel(%arg0: i32, %arg1: i32, %arg2: memref<1x133x256xf32, #tpu.memory_space<vmem>>, %arg3: memref<1x256x133xf32, #tpu.memory_space<vmem>>) attributes {dimension_semantics = [#tpu.dimension_semantics<parallel>, #tpu.dimension_semantics<parallel>], iteration_bounds = array<i64: 2, 1>, scalar_prefetch = 0 : i64, scratch_operands = 0 : i64, tpu.core_type = #tpu.core_type<tc>, window_params = [{transform_indices = @transform_0, window_bounds = array<i64: 1, 133, 256>}, {transform_indices = @transform_1, window_bounds = array<i64: 1, 256, 133>}]} {
    %c0 = arith.constant 0 : index
    %c0_0 = arith.constant 0 : index
    %c0_1 = arith.constant 0 : index
    %0 = vector.load %arg2[%c0, %c0_0, %c0_1] : memref<1x133x256xf32, #tpu.memory_space<vmem>>, vector<1x133x256xf32>
    %1 = vector.shape_cast %0 : vector<1x133x256xf32> to vector<133x256xf32>
    %2 = tpu.transpose %1, [1, 0] : vector<133x256xf32> -> vector<256x133xf32>
    %c0_2 = arith.constant 0 : index
    %c0_3 = arith.constant 0 : index
    %c0_4 = arith.constant 0 : index
    %3 = vector.load %arg3[%c0_2, %c0_3, %c0_4] : memref<1x256x133xf32, #tpu.memory_space<vmem>>, vector<1x256x133xf32>
    %4 = vector.shape_cast %3 : vector<1x256x133xf32> to vector<256x133xf32>
    %5 = vector.shape_cast %2 : vector<256x133xf32> to vector<1x256x133xf32>
    tpu.vector_store %arg3[%c0_2, %c0_3, %c0_4], %5 {strides = array<i32>} : memref<1x256x133xf32, #tpu.memory_space<vmem>>, vector<1x256x133xf32>,
    return
  }
  func.func @transform_0(%arg0: i32, %arg1: i32) -> (i32, i32, i32) {
    %c0_i32 = arith.constant 0 : i32
    %c0_i32_0 = arith.constant 0 : i32
    return %arg0, %c0_i32, %arg1 : i32, i32, i32
  }
  func.func @transform_1(%arg0: i32, %arg1: i32) -> (i32, i32, i32) {
    %c0_i32 = arith.constant 0 : i32
    %c0_i32_0 = arith.constant 0 : i32
    return %arg0, %arg1, %c0_i32 : i32, i32, i32
  }
}

</mosaic_0001>

<bundles_post_ra>
// kernel: tpu_custom_call.1
= control target key start
LH: loop header
LB: loop body
LE: loop exit
PB: predicated region body
PF: predicated region fallthrough
CT: control target
= control target key end

     0   :  { %s549_s6 = smov 0   ;;  %s551_s7 = smov 0   ;;  %s720_s0 = inlined_call_operand.vmem [shape: f32[2,133,256], index: 0, kind: input, shape index: {}]   ;;  %s721_s1 = inlined_call_operand.vmem [shape: f32[2,256,133], index: 1, kind: output, shape index: {}]  }
   0x1   :  { %s553_s8 = smov 0  }
   0x2 LB: > { %s23_s9 = sadd.s32 1, %s533_s7  ;;  %p482_p0 = scmp.ge.s32.totalorder %s537_s8, 1  ;;  %s537_s8 = sphi %s553_s8, %s11_s8   ;;  %s533_s7 = sphi %s551_s7, %s723_s7   ;;  %s529_s6 = sphi %s549_s6, %s722_s6  }
   0x3   : > { %p25_p1 = scmp.ge.s32.totalorder %s23_s9, 2  ;;  %p108_p2 = scmp.lt.s32.totalorder %s537_s8, 3 }
   0x5   : > { %s725_s9 = smov (%p25_p1, %s23_s9), 0  ;;  %p109_p3 = pnand %p482_p0, %p108_p2 }
   0x6   : > { %p138_p4 = scmp.lt.s32.totalorder (!%p109_p3), %s529_s6, 1 }
   0x7   : > { %112 = sbr.rel (%p109_p3) target bundleno = 267 (0x10b), region = 24 }
   0xc   : > { %s727_s6 = smov (!%p138_p4, %s529_s6), 1  ;;  %vm321_vm0 = vcmask 39936  }
   0xd   : > { %s489_s10 = smul.u32 272, %s727_s6  ;;  %s488_s14 = sshll.u32 %s727_s6, 9 }
   0xe   : > { %s613_s17 = scalar_lea.vmem %s721_s1, %s488_s14 }
   0xf   : > { %s573_s13 = scalar_lea.vmem %s720_s0, %s489_s10 }
  0x10   : > { %v159_v0 = vld [vmem:[%s573_s13 + $0x8] sm:$0xff]  ;;  %v158_v1 = vld [vmem:[%s573_s13] sm:$0xff]  ;;  %v161_v2 = vld [vmem:[%s573_s13 + $0x18] sm:$0xff] }
  0x11   : > { %224 = vxpose.xlu1.b32.start [1/16] %v159_v0, 128  ;;  %192 = vxpose.xlu0.b32.start [1/16] %v158_v1, 128  ;;  %v160_v3 = vld [vmem:[%s573_s13 + $0x10] sm:$0xff]  ;;  %v163_v4 = vld [vmem:[%s573_s13 + $0x28] sm:$0xff]  ;;  %v162_v5 = vld [vmem:[%s573_s13 + $0x20] sm:$0xff] }
  0x12   : > { %v165_v6 = vld [vmem:[%s573_s13 + $0x38] sm:$0xff]  ;;  %v164_v7 = vld [vmem:[%s573_s13 + $0x30] sm:$0xff]  ;;  %v167_v8 = vld [vmem:[%s573_s13 + $0x48] sm:$0xff] }
  0x13   : > { %v166_v9 = vld [vmem:[%s573_s13 + $0x40] sm:$0xff]  ;;  %v169_v10 = vld [vmem:[%s573_s13 + $0x58] sm:$0xff]  ;;  %v168_v11 = vld [vmem:[%s573_s13 + $0x50] sm:$0xff] }
  0x14   : > { %v171_v12 = vld [vmem:[%s573_s13 + $0x68] sm:$0xff]  ;;  %v170_v13 = vld [vmem:[%s573_s13 + $0x60] sm:$0xff]  ;;  %v173_v14 = vld [vmem:[%s573_s13 + $0x78] sm:$0xff] }
  0x15   : > { %225 = vxpose.xlu1.b32.cont [2/16] %v161_v2, 128  ;;  %193 = vxpose.xlu0.b32.cont [2/16] %v160_v3, 128  ;;  %v172_v15 = vld [vmem:[%s573_s13 + $0x70] sm:$0xff]  ;;  %v175_v16 = vld [vmem:[%s573_s13 + $0x88] sm:$0xff]  ;;  %v174_v17 = vld [vmem:[%s573_s13 + $0x80] sm:$0xff] }
  0x16   : > { %v177_v18 = vld [vmem:[%s573_s13 + $0x98] sm:$0xff]  ;;  %v176_v19 = vld [vmem:[%s573_s13 + $0x90] sm:$0xff]  ;;  %v179_v20 = vld [vmem:[%s573_s13 + $0xa8] sm:$0xff] }
  0x17   : > { %v178_v21 = vld [vmem:[%s573_s13 + $0xa0] sm:$0xff]  ;;  %v181_v22 = vld [vmem:[%s573_s13 + $0xb8] sm:$0xff]  ;;  %v180_v23 = vld [vmem:[%s573_s13 + $0xb0] sm:$0xff] }
  0x18   : > { %v183_v24 = vld [vmem:[%s573_s13 + $0xc8] sm:$0xff]  ;;  %v182_v25 = vld [vmem:[%s573_s13 + $0xc0] sm:$0xff]  ;;  %v185_v26 = vld [vmem:[%s573_s13 + $0xd8] sm:$0xff] }
  0x19   : > { %226 = vxpose.xlu1.b32.cont [3/16] %v163_v4, 128  ;;  %194 = vxpose.xlu0.b32.cont [3/16] %v162_v5, 128  ;;  %v184_v27 = vld [vmem:[%s573_s13 + $0xd0] sm:$0xff]  ;;  %v187_v28 = vld [vmem:[%s573_s13 + $0xe8] sm:$0xff]  ;;  %v186_v29 = vld [vmem:[%s573_s13 + $0xe0] sm:$0xff] }
  0x1a   : > { %v189_v30 = vld [vmem:[%s573_s13 + $0xf8] sm:$0xff]  ;;  %v188_v31 = vld [vmem:[%s573_s13 + $0xf0] sm:$0xff]  ;;  %v191_v32 = vld [vmem:[%s573_s13 + $0x108] sm:$0x1f] }
  0x1b   : > { %v190_v33 = vld [vmem:[%s573_s13 + $0x100] sm:$0x1f] }
  0x1d   : > { %227 = vxpose.xlu1.b32.cont [4/16] %v165_v6, 128  ;;  %195 = vxpose.xlu0.b32.cont [4/16] %v164_v7, 128 }
  0x21   : > { %228 = vxpose.xlu1.b32.cont [5/16] %v167_v8, 128  ;;  %196 = vxpose.xlu0.b32.cont [5/16] %v166_v9, 128 }
  0x25   : > { %229 = vxpose.xlu1.b32.cont [6/16] %v169_v10, 128  ;;  %197 = vxpose.xlu0.b32.cont [6/16] %v168_v11, 128 }
  0x29   : > { %230 = vxpose.xlu1.b32.cont [7/16] %v171_v12, 128  ;;  %198 = vxpose.xlu0.b32.cont [7/16] %v170_v13, 128 }
  0x2d   : > { %231 = vxpose.xlu1.b32.cont [8/16] %v173_v14, 128  ;;  %199 = vxpose.xlu0.b32.cont [8/16] %v172_v15, 128 }
  0x31   : > { %232 = vxpose.xlu1.b32.cont [9/16] %v175_v16, 128  ;;  %200 = vxpose.xlu0.b32.cont [9/16] %v174_v17, 128 }
  0x35   : > { %233 = vxpose.xlu1.b32.cont [10/16] %v177_v18, 128  ;;  %201 = vxpose.xlu0.b32.cont [10/16] %v176_v19, 128 }
  0x39   : > { %234 = vxpose.xlu1.b32.cont [11/16] %v179_v20, 128  ;;  %202 = vxpose.xlu0.b32.cont [11/16] %v178_v21, 128 }
  0x3d   : > { %235 = vxpose.xlu1.b32.cont [12/16] %v181_v22, 128  ;;  %203 = vxpose.xlu0.b32.cont [12/16] %v180_v23, 128 }
  0x41   : > { %236 = vxpose.xlu1.b32.cont [13/16] %v183_v24, 128  ;;  %204 = vxpose.xlu0.b32.cont [13/16] %v182_v25, 128 }
  0x45   : > { %237 = vxpose.xlu1.b32.cont [14/16] %v185_v26, 128  ;;  %205 = vxpose.xlu0.b32.cont [14/16] %v184_v27, 128 }
  0x49   : > { %238 = vxpose.xlu1.b32.cont [15/16] %v187_v28, 128  ;;  %206 = vxpose.xlu0.b32.cont [15/16] %v186_v29, 128 }
  0x4d   : > { %239 = vxpose.xlu1.b32.end [16/16] %v189_v30, 128  ;;  %207 = vxpose.xlu0.b32.end [16/16] %v188_v31, 128 }
  0x51   : > { %288 = vxpose.xlu1.b32.start.end [1/1] (short) %v191_v32, 128  ;;  %256 = vxpose.xlu0.b32.start.end [1/1] (short) %v190_v33, 128 }
  0x8d   : > { %v240_v34 = vpop.trf.xlu1  ;;  %v208_v35 = vpop.trf.xlu0 }
  0x8e   : > { %353 = vst [vmem:[%s613_s17 + $0x100] sm:$0xff] %v240_v34  ;;  %320 = vst [vmem:[%s613_s17] sm:$0xff] %v208_v35 }
  0x91   : > { %v241_v36 = vpop.trf.xlu1  ;;  %v209_v37 = vpop.trf.xlu0 }
  0x92   : > { %355 = vst [vmem:[%s613_s17 + $0x110] sm:$0xff] %v241_v36  ;;  %323 = vst [vmem:[%s613_s17 + $0x10] sm:$0xff] %v209_v37 }
  0x95   : > { %v242_v38 = vpop.trf.xlu1  ;;  %v210_v39 = vpop.trf.xlu0 }
  0x96   : > { %357 = vst [vmem:[%s613_s17 + $0x120] sm:$0xff] %v242_v38  ;;  %325 = vst [vmem:[%s613_s17 + $0x20] sm:$0xff] %v210_v39 }
  0x99   : > { %v243_v40 = vpop.trf.xlu1  ;;  %v211_v41 = vpop.trf.xlu0 }
  0x9a   : > { %359 = vst [vmem:[%s613_s17 + $0x130] sm:$0xff] %v243_v40  ;;  %327 = vst [vmem:[%s613_s17 + $0x30] sm:$0xff] %v211_v41 }
  0x9d   : > { %v244_v42 = vpop.trf.xlu1  ;;  %v212_v43 = vpop.trf.xlu0 }
  0x9e   : > { %361 = vst [vmem:[%s613_s17 + $0x140] sm:$0xff] %v244_v42  ;;  %329 = vst [vmem:[%s613_s17 + $0x40] sm:$0xff] %v212_v43 }
  0xa1   : > { %v245_v44 = vpop.trf.xlu1  ;;  %v213_v45 = vpop.trf.xlu0 }
  0xa2   : > { %363 = vst [vmem:[%s613_s17 + $0x150] sm:$0xff] %v245_v44  ;;  %331 = vst [vmem:[%s613_s17 + $0x50] sm:$0xff] %v213_v45 }
  0xa5   : > { %v246_v46 = vpop.trf.xlu1  ;;  %v214_v47 = vpop.trf.xlu0 }
  0xa6   : > { %365 = vst [vmem:[%s613_s17 + $0x160] sm:$0xff] %v246_v46  ;;  %333 = vst [vmem:[%s613_s17 + $0x60] sm:$0xff] %v214_v47 }
  0xa9   : > { %v247_v48 = vpop.trf.xlu1  ;;  %v215_v49 = vpop.trf.xlu0 }
  0xaa   : > { %367 = vst [vmem:[%s613_s17 + $0x170] sm:$0xff] %v247_v48  ;;  %335 = vst [vmem:[%s613_s17 + $0x70] sm:$0xff] %v215_v49 }
  0xad   : > { %v248_v50 = vpop.trf.xlu1  ;;  %v216_v51 = vpop.trf.xlu0 }
  0xae   : > { %369 = vst [vmem:[%s613_s17 + $0x180] sm:$0xff] %v248_v50  ;;  %337 = vst [vmem:[%s613_s17 + $0x80] sm:$0xff] %v216_v51 }
  0xb1   : > { %v249_v52 = vpop.trf.xlu1  ;;  %v217_v53 = vpop.trf.xlu0 }
  0xb2   : > { %371 = vst [vmem:[%s613_s17 + $0x190] sm:$0xff] %v249_v52  ;;  %339 = vst [vmem:[%s613_s17 + $0x90] sm:$0xff] %v217_v53 }
  0xb5   : > { %v250_v54 = vpop.trf.xlu1  ;;  %v218_v55 = vpop.trf.xlu0 }
  0xb6   : > { %373 = vst [vmem:[%s613_s17 + $0x1a0] sm:$0xff] %v250_v54  ;;  %341 = vst [vmem:[%s613_s17 + $0xa0] sm:$0xff] %v218_v55 }
  0xb9   : > { %v251_v56 = vpop.trf.xlu1  ;;  %v219_v57 = vpop.trf.xlu0 }
  0xba   : > { %375 = vst [vmem:[%s613_s17 + $0x1b0] sm:$0xff] %v251_v56  ;;  %343 = vst [vmem:[%s613_s17 + $0xb0] sm:$0xff] %v219_v57 }
  0xbd   : > { %v252_v58 = vpop.trf.xlu1  ;;  %v220_v59 = vpop.trf.xlu0 }
  0xbe   : > { %377 = vst [vmem:[%s613_s17 + $0x1c0] sm:$0xff] %v252_v58  ;;  %345 = vst [vmem:[%s613_s17 + $0xc0] sm:$0xff] %v220_v59 }
  0xc1   : > { %v253_v60 = vpop.trf.xlu1  ;;  %v221_v61 = vpop.trf.xlu0 }
  0xc2   : > { %379 = vst [vmem:[%s613_s17 + $0x1d0] sm:$0xff] %v253_v60  ;;  %347 = vst [vmem:[%s613_s17 + $0xd0] sm:$0xff] %v221_v61 }
  0xc5   : > { %v254_v62 = vpop.trf.xlu1  ;;  %v222_v63 = vpop.trf.xlu0 }
  0xc6   : > { %381 = vst [vmem:[%s613_s17 + $0x1e0] sm:$0xff] %v254_v62  ;;  %349 = vst [vmem:[%s613_s17 + $0xe0] sm:$0xff] %v222_v63 }
  0xc9   : > { %v255_v0 = vpop.trf.xlu1  ;;  %v223_v1 = vpop.trf.xlu0 }
  0xca   : > { %383 = vst [vmem:[%s613_s17 + $0x1f0] sm:$0xff] %v255_v0  ;;  %351 = vst [vmem:[%s613_s17 + $0xf0] sm:$0xff] %v223_v1 }
  0xcd   : > { %v304_v2 = vpop.trf.xlu1  ;;  %v272_v3 = vpop.trf.xlu0 }
  0xce   : > { %354 = vst.msk [vmem:[%s613_s17 + $0x108] sm:$0xff] %vm321_vm0, %v304_v2  ;;  %322 = vst.msk [vmem:[%s613_s17 + $0x8] sm:$0xff] %vm321_vm0, %v272_v3 }
  0xd1   : > { %v305_v4 = vpop.trf.xlu1  ;;  %v273_v5 = vpop.trf.xlu0 }
  0xd2   : > { %356 = vst.msk [vmem:[%s613_s17 + $0x118] sm:$0xff] %vm321_vm0, %v305_v4  ;;  %324 = vst.msk [vmem:[%s613_s17 + $0x18] sm:$0xff] %vm321_vm0, %v273_v5 }
  0xd5   : > { %v306_v6 = vpop.trf.xlu1  ;;  %v274_v7 = vpop.trf.xlu0 }
  0xd6   : > { %358 = vst.msk [vmem:[%s613_s17 + $0x128] sm:$0xff] %vm321_vm0, %v306_v6  ;;  %326 = vst.msk [vmem:[%s613_s17 + $0x28] sm:$0xff] %vm321_vm0, %v274_v7 }
  0xd9   : > { %v307_v8 = vpop.trf.xlu1  ;;  %v275_v9 = vpop.trf.xlu0 }
  0xda   : > { %360 = vst.msk [vmem:[%s613_s17 + $0x138] sm:$0xff] %vm321_vm0, %v307_v8  ;;  %328 = vst.msk [vmem:[%s613_s17 + $0x38] sm:$0xff] %vm321_vm0, %v275_v9 }
  0xdd   : > { %v308_v10 = vpop.trf.xlu1  ;;  %v276_v11 = vpop.trf.xlu0 }
  0xde   : > { %362 = vst.msk [vmem:[%s613_s17 + $0x148] sm:$0xff] %vm321_vm0, %v308_v10  ;;  %330 = vst.msk [vmem:[%s613_s17 + $0x48] sm:$0xff] %vm321_vm0, %v276_v11 }
  0xe1   : > { %v309_v12 = vpop.trf.xlu1  ;;  %v277_v13 = vpop.trf.xlu0 }
  0xe2   : > { %364 = vst.msk [vmem:[%s613_s17 + $0x158] sm:$0xff] %vm321_vm0, %v309_v12  ;;  %332 = vst.msk [vmem:[%s613_s17 + $0x58] sm:$0xff] %vm321_vm0, %v277_v13 }
  0xe5   : > { %v310_v14 = vpop.trf.xlu1  ;;  %v278_v15 = vpop.trf.xlu0 }
  0xe6   : > { %366 = vst.msk [vmem:[%s613_s17 + $0x168] sm:$0xff] %vm321_vm0, %v310_v14  ;;  %334 = vst.msk [vmem:[%s613_s17 + $0x68] sm:$0xff] %vm321_vm0, %v278_v15 }
  0xe9   : > { %v311_v16 = vpop.trf.xlu1  ;;  %v279_v17 = vpop.trf.xlu0 }
  0xea   : > { %368 = vst.msk [vmem:[%s613_s17 + $0x178] sm:$0xff] %vm321_vm0, %v311_v16  ;;  %336 = vst.msk [vmem:[%s613_s17 + $0x78] sm:$0xff] %vm321_vm0, %v279_v17 }
  0xed   : > { %v312_v18 = vpop.trf.xlu1  ;;  %v280_v19 = vpop.trf.xlu0 }
  0xee   : > { %370 = vst.msk [vmem:[%s613_s17 + $0x188] sm:$0xff] %vm321_vm0, %v312_v18  ;;  %338 = vst.msk [vmem:[%s613_s17 + $0x88] sm:$0xff] %vm321_vm0, %v280_v19 }
  0xf1   : > { %v313_v20 = vpop.trf.xlu1  ;;  %v281_v21 = vpop.trf.xlu0 }
  0xf2   : > { %372 = vst.msk [vmem:[%s613_s17 + $0x198] sm:$0xff] %vm321_vm0, %v313_v20  ;;  %340 = vst.msk [vmem:[%s613_s17 + $0x98] sm:$0xff] %vm321_vm0, %v281_v21 }
  0xf5   : > { %v314_v22 = vpop.trf.xlu1  ;;  %v282_v23 = vpop.trf.xlu0 }
  0xf6   : > { %374 = vst.msk [vmem:[%s613_s17 + $0x1a8] sm:$0xff] %vm321_vm0, %v314_v22  ;;  %342 = vst.msk [vmem:[%s613_s17 + $0xa8] sm:$0xff] %vm321_vm0, %v282_v23 }
  0xf9   : > { %v315_v24 = vpop.trf.xlu1  ;;  %v283_v25 = vpop.trf.xlu0 }
  0xfa   : > { %376 = vst.msk [vmem:[%s613_s17 + $0x1b8] sm:$0xff] %vm321_vm0, %v315_v24  ;;  %344 = vst.msk [vmem:[%s613_s17 + $0xb8] sm:$0xff] %vm321_vm0, %v283_v25 }
  0xfd   : > { %v316_v26 = vpop.trf.xlu1  ;;  %v284_v27 = vpop.trf.xlu0 }
  0xfe   : > { %378 = vst.msk [vmem:[%s613_s17 + $0x1c8] sm:$0xff] %vm321_vm0, %v316_v26  ;;  %346 = vst.msk [vmem:[%s613_s17 + $0xc8] sm:$0xff] %vm321_vm0, %v284_v27 }
 0x101   : > { %v317_v28 = vpop.trf.xlu1  ;;  %v285_v29 = vpop.trf.xlu0 }
 0x102   : > { %380 = vst.msk [vmem:[%s613_s17 + $0x1d8] sm:$0xff] %vm321_vm0, %v317_v28  ;;  %348 = vst.msk [vmem:[%s613_s17 + $0xd8] sm:$0xff] %vm321_vm0, %v285_v29 }
 0x105   : > { %v318_v30 = vpop.trf.xlu1  ;;  %v286_v31 = vpop.trf.xlu0 }
 0x106   : > { %382 = vst.msk [vmem:[%s613_s17 + $0x1e8] sm:$0xff] %vm321_vm0, %v318_v30  ;;  %350 = vst.msk [vmem:[%s613_s17 + $0xe8] sm:$0xff] %vm321_vm0, %v286_v31 }
 0x109   : > { %v319_v32 = vpop.trf.xlu1  ;;  %v287_v33 = vpop.trf.xlu0 }
 0x10a   : > { %384 = vst.msk [vmem:[%s613_s17 + $0x1f8] sm:$0xff] %vm321_vm0, %v319_v32  ;;  %352 = vst.msk [vmem:[%s613_s17 + $0xf8] sm:$0xff] %vm321_vm0, %v287_v33 }
 0x10b PF: > { %s11_s8 = sadd.s32 1, %s537_s8   ;;  %s722_s6 = smov %s533_s7 }
 0x10c   : > { %p8_p5 = scmp.ge.s32.totalorder %s11_s8, 4   ;;  %s723_s7 = smov %s725_s9 }
 0x10e   :  { %10 = sbr.rel (!%p8_p5) target bundleno = 2 (0x2), region = 54 }

</bundles_post_ra>
